<compile_context>
chip_gen: v7x
topology: tpu7x:2x2x1
jax: 0.10.0
libtpu: 0.0.40
codegen_flags: <defaults>
</compile_context>

<pallas_src>
import functools

import jax
import jax.numpy as jnp
from jax import lax
from jax.experimental import pallas as pl
from jax.experimental.pallas import tpu as pltpu


def _embed_sum_kernel(idx_ref, emb_ref, out_ref, acc_ref, *, vocab_tile):
    """acc[r] += sum_l onehot(idx[r,l] in this vocab tile) @ emb_tile."""
    k = pl.program_id(1)

    @pl.when(k == 0)
    def _():
        acc_ref[...] = jnp.zeros_like(acc_ref)

    idx = idx_ref[...]                                   # [TN, L] int32
    emb = emb_ref[...]                                   # [TV, D] f32
    tn, num_labels = idx.shape
    tv = emb.shape[0]

    # Index local to this vocab tile; sentinel (-1) and out-of-tile indices
    # match nothing, so no mask multiply is needed.
    local = idx - k * vocab_tile                         # [TN, L]
    iota_tv = lax.broadcasted_iota(jnp.int32, (tn, tv), 1)

    # Accumulate per-label one-hots; L is small & static so this unrolls with
    # only a single [TN, TV] live intermediate (no [TN, L, TV] tensor).
    counts = jnp.zeros((tn, tv), jnp.float32)
    for j in range(num_labels):
        counts = counts + (local[:, j:j + 1] == iota_tv).astype(jnp.float32)

    # Sum of embeddings for this vocab tile == counts @ emb_tile (MXU).
    acc_ref[...] += jnp.dot(counts, emb, preferred_element_type=jnp.float32)

    @pl.when(k == pl.num_programs(1) - 1)
    def _():
        out_ref[...] = acc_ref[...].astype(out_ref.dtype)


def _round_up(x, m):
    return (x + m - 1) // m * m


def multi_label_embedding(idx, emb, *, row_tile=256, vocab_tile=512):
    """idx: [N, L] int32 (padding slots = -1), emb: [V, D] f32 -> [N, D] f32."""
    n, l = idx.shape
    v, d = emb.shape

    # Lane-dense output / full MXU N dim: pad D to a multiple of 128.
    d_pad = _round_up(d, 128)

    # Row tiling (MXU M dim): large tiles, but never bigger than the padded N.
    row_tile = min(row_tile, _round_up(n, 8))
    n_pad = _round_up(n, row_tile)

    # Vocab tiling (reduction axis): bounds the table's VMEM footprint.
    vocab_tile = min(vocab_tile, _round_up(v, 8))
    v_pad = _round_up(v, vocab_tile)

    # One-time host-side padding (sentinel rows produce all-zero output rows).
    idx_p = jnp.full((n_pad, l), -1, dtype=jnp.int32).at[:n, :].set(idx)
    emb_p = jnp.zeros((v_pad, d_pad), dtype=jnp.float32).at[:v, :d].set(
        emb.astype(jnp.float32))

    grid = (n_pad // row_tile, v_pad // vocab_tile)

    out = pl.pallas_call(
        functools.partial(_embed_sum_kernel, vocab_tile=vocab_tile),
        out_shape=jax.ShapeDtypeStruct((n_pad, d_pad), jnp.float32),
        grid_spec=pltpu.PrefetchScalarGridSpec(
            num_scalar_prefetch=0,
            grid=grid,
            in_specs=[
                pl.BlockSpec((row_tile, l), lambda i, k: (i, 0)),        # idx tile
                pl.BlockSpec((vocab_tile, d_pad), lambda i, k: (k, 0)),  # emb tile
            ],
            out_specs=pl.BlockSpec((row_tile, d_pad), lambda i, k: (i, 0)),
            scratch_shapes=[pltpu.VMEM((row_tile, d_pad), jnp.float32)],
        ),
        compiler_params=pltpu.CompilerParams(
            dimension_semantics=("parallel", "arbitrary"),
            vmem_limit_bytes=64 * 1024 * 1024,
        ),
    )(idx_p, emb_p)
    return out[:n, :d]


class MultiLabelEmbeddingLayerPallas:
    """JAX/Pallas port of MultiLabelEmbeddingLayer (inference path)."""

    def __init__(self, embedding_size, key, dropout=0.5):
        self.vocab, self.dim = embedding_size
        # Deterministic stand-in for torch.randn init of the embedding matrix.
        self.matrix = jax.random.normal(
            key, (self.vocab, self.dim), dtype=jnp.float32)
        self.dropout = dropout  # identity at inference

    def __call__(self, x):
        """x: nested python list [batch][seq][variable #labels >= 1]."""
        batch = len(x)
        seq_len = len(x[0])
        max_l = max(len(x[i][j]) for i in range(batch) for j in range(seq_len))

        rows = []
        for i in range(batch):
            for j in range(seq_len):
                labels = list(map(int, x[i][j]))
                rows.append(labels + [-1] * (max_l - len(labels)))  # -1 = pad sentinel
        idx = jnp.asarray(rows, dtype=jnp.int32)

        out = multi_label_embedding(idx, self.matrix)
        return out.reshape(batch, seq_len, self.dim)


if __name__ == "__main__":
    key = jax.random.PRNGKey(0)
    k_emb, k_idx = jax.random.split(key)

    VOCAB, DIM = 64, 32
    BATCH, SEQ = 2, 8

    layer = MultiLabelEmbeddingLayerPallas((VOCAB, DIM), k_emb, dropout=0.5)

    # Deterministic variable-length multi-label input [batch][seq][1..3 labels].
    raw = jax.random.randint(k_idx, (BATCH, SEQ, 3), 0, VOCAB)
    raw = jax.device_get(raw)
    x = [[list(map(int, raw[i, j][: 1 + (i + j) % 3])) for j in range(SEQ)]
         for i in range(BATCH)]

    out = layer(x)
    out = jax.block_until_ready(out)

    # Pure-JAX reference check (gather + sum), same semantics as the torch loop.
    ref_rows = []
    for i in range(BATCH):
        for j in range(SEQ):
            ids = jnp.asarray(x[i][j], dtype=jnp.int32)
            ref_rows.append(jnp.take(layer.matrix, ids, axis=0).sum(axis=0))
    ref = jnp.stack(ref_rows).reshape(BATCH, SEQ, DIM)

    assert out.shape == (BATCH, SEQ, DIM), out.shape
    assert jnp.allclose(out, ref, atol=1e-5, rtol=1e-5), "mismatch vs reference"
    print("KERNEL_OK")
</pallas_src>

<mosaic_0001>
module attributes {stable_mosaic.version = 11 : i64} {
  func.func @_embed_sum_kernel(%arg0: i32, %arg1: i32, %arg2: memref<16x3xi32, #tpu.memory_space<vmem>>, %arg3: memref<64x128xf32, #tpu.memory_space<vmem>>, %arg4: memref<16x128xf32, #tpu.memory_space<vmem>>, %arg5: memref<16x128xf32, #tpu.memory_space<vmem>>) attributes {dimension_semantics = [#tpu.dimension_semantics<parallel>, #tpu.dimension_semantics<arbitrary>], iteration_bounds = array<i64: 1, 1>, scalar_prefetch = 0 : i64, scratch_operands = 1 : i64, tpu.core_type = #tpu.core_type<tc>, window_params = [{transform_indices = @transform_0, window_bounds = array<i64: 16, 3>}, {transform_indices = @transform_1, window_bounds = array<i64: 64, 128>}, {transform_indices = @transform_2, window_bounds = array<i64: 16, 128>}]} {
    %c0_i32 = arith.constant 0 : i32
    %0 = arith.cmpi eq, %arg1, %c0_i32 : i32
    %1 = arith.extui %0 : i1 to i32
    %c0_i32_0 = arith.constant 0 : i32
    %2 = arith.cmpi ne, %1, %c0_i32_0 : i32
    scf.if %2 {
      %cst_11 = arith.constant 0.000000e+00 : f32
      %35 = vector.broadcast %cst_11 : f32 to vector<16x128xf32>
      %c0_12 = arith.constant 0 : index
      %c0_13 = arith.constant 0 : index
      %36 = vector.load %arg5[%c0_12, %c0_13] : memref<16x128xf32, #tpu.memory_space<vmem>>, vector<16x128xf32>
      tpu.vector_store %arg5[%c0_12, %c0_13], %35 {strides = array<i32>} : memref<16x128xf32, #tpu.memory_space<vmem>>, vector<16x128xf32>,
    } else {
    }
    %c0 = arith.constant 0 : index
    %c0_1 = arith.constant 0 : index
    %3 = vector.load %arg2[%c0, %c0_1] : memref<16x3xi32, #tpu.memory_space<vmem>>, vector<16x3xi32>
    %c0_2 = arith.constant 0 : index
    %c0_3 = arith.constant 0 : index
    %4 = vector.load %arg3[%c0_2, %c0_3] : memref<64x128xf32, #tpu.memory_space<vmem>>, vector<64x128xf32>
    %c64_i32 = arith.constant 64 : i32
    %5 = arith.muli %arg1, %c64_i32 : i32
    %6 = vector.broadcast %5 : i32 to vector<16x3xi32>
    %7 = arith.subi %3, %6 : vector<16x3xi32>
    %8 = tpu.iota {dimensions = array<i32: 1>} : vector<16x64xi32>
    %cst = arith.constant 0.000000e+00 : f32
    %9 = vector.broadcast %cst : f32 to vector<16x64xf32>
    %10 = vector.extract_strided_slice %7 {offsets = [0, 0], sizes = [16, 1], strides = [1, 1]} : vector<16x3xi32> to vector<16x1xi32>
    %11 = vector.broadcast %10 : vector<16x1xi32> to vector<16x64xi32>
    %12 = arith.cmpi eq, %11, %8 : vector<16x64xi32>
    %13 = arith.extui %12 : vector<16x64xi1> to vector<16x64xi32>
    %14 = arith.sitofp %13 : vector<16x64xi32> to vector<16x64xf32>
    %15 = arith.addf %9, %14 : vector<16x64xf32>
    %16 = vector.extract_strided_slice %7 {offsets = [0, 1], sizes = [16, 1], strides = [1, 1]} : vector<16x3xi32> to vector<16x1xi32>
    %17 = vector.broadcast %16 : vector<16x1xi32> to vector<16x64xi32>
    %18 = arith.cmpi eq, %17, %8 : vector<16x64xi32>
    %19 = arith.extui %18 : vector<16x64xi1> to vector<16x64xi32>
    %20 = arith.sitofp %19 : vector<16x64xi32> to vector<16x64xf32>
    %21 = arith.addf %15, %20 : vector<16x64xf32>
    %22 = vector.extract_strided_slice %7 {offsets = [0, 2], sizes = [16, 1], strides = [1, 1]} : vector<16x3xi32> to vector<16x1xi32>
    %23 = vector.broadcast %22 : vector<16x1xi32> to vector<16x64xi32>
    %24 = arith.cmpi eq, %23, %8 : vector<16x64xi32>
    %25 = arith.extui %24 : vector<16x64xi1> to vector<16x64xi32>
    %26 = arith.sitofp %25 : vector<16x64xi32> to vector<16x64xf32>
    %27 = arith.addf %21, %26 : vector<16x64xf32>
    %c0_4 = arith.constant 0 : index
    %c0_5 = arith.constant 0 : index
    %28 = vector.load %arg5[%c0_4, %c0_5] : memref<16x128xf32, #tpu.memory_space<vmem>>, vector<16x128xf32>
    %cst_6 = arith.constant dense<0.000000e+00> : vector<16x128xf32>
    %29 = tpu.matmul %27, %4, %cst_6 {dimension_numbers = #tpu.dot_dimension_numbers<[1], [0], [0], [1], [0, 0, 1, 1], [], []>} : vector<16x64xf32>, vector<64x128xf32>, vector<16x128xf32> -> vector<16x128xf32>
    %30 = arith.addf %28, %29 : vector<16x128xf32>
    %c0_7 = arith.constant 0 : index
    %c0_8 = arith.constant 0 : index
    %31 = vector.load %arg5[%c0_7, %c0_8] : memref<16x128xf32, #tpu.memory_space<vmem>>, vector<16x128xf32>
    tpu.vector_store %arg5[%c0_7, %c0_8], %30 {strides = array<i32>} : memref<16x128xf32, #tpu.memory_space<vmem>>, vector<16x128xf32>,
    %c0_i32_9 = arith.constant 0 : i32
    %32 = arith.cmpi eq, %arg1, %c0_i32_9 : i32
    %33 = arith.extui %32 : i1 to i32
    %c0_i32_10 = arith.constant 0 : i32
    %34 = arith.cmpi ne, %33, %c0_i32_10 : i32
    scf.if %34 {
      %c0_11 = arith.constant 0 : index
      %c0_12 = arith.constant 0 : index
      %35 = vector.load %arg5[%c0_11, %c0_12] : memref<16x128xf32, #tpu.memory_space<vmem>>, vector<16x128xf32>
      %c0_13 = arith.constant 0 : index
      %c0_14 = arith.constant 0 : index
      %36 = vector.load %arg4[%c0_13, %c0_14] : memref<16x128xf32, #tpu.memory_space<vmem>>, vector<16x128xf32>
      tpu.vector_store %arg4[%c0_13, %c0_14], %35 {strides = array<i32>} : memref<16x128xf32, #tpu.memory_space<vmem>>, vector<16x128xf32>,
    } else {
    }
    return
  }
  func.func @transform_0(%arg0: i32, %arg1: i32) -> (i32, i32) {
    %c0_i32 = arith.constant 0 : i32
    %c0_i32_0 = arith.constant 0 : i32
    return %arg0, %c0_i32 : i32, i32
  }
  func.func @transform_1(%arg0: i32, %arg1: i32) -> (i32, i32) {
    %c0_i32 = arith.constant 0 : i32
    %c0_i32_0 = arith.constant 0 : i32
    return %arg1, %c0_i32 : i32, i32
  }
  func.func @transform_2(%arg0: i32, %arg1: i32) -> (i32, i32) {
    %c0_i32 = arith.constant 0 : i32
    %c0_i32_0 = arith.constant 0 : i32
    return %arg0, %c0_i32 : i32, i32
  }
}

</mosaic_0001>

<bundles_post_ra>
// kernel: tpu_custom_call.1
= control target key start
LH: loop header
LB: loop body
LE: loop exit
PB: predicated region body
PF: predicated region fallthrough
CT: control target
= control target key end

     0   :  { %7 = vsyncpa [#allocation4], 0  ;;  %s426_s0 = inlined_call_operand.hbm [shape: s32[16,3], index: 0, kind: input, shape index: {}]   ;;  %s427_s1 = inlined_call_operand.hbm [shape: f32[64,128], index: 1, kind: input, shape index: {}]   ;;  %s428_s2 = inlined_call_operand.hbm [shape: f32[16,128], index: 2, kind: output, shape index: {}]  }
   0x1   :  { %8 = vsyncpa [#allocation7], 0 }
   0x2   :  { %9 = vsyncpa [#allocation5], 0  ;;  %s357_s9 = smov [#allocation3]   ;;  %s285_s13 = scalar_lea.hbm %s426_s0, 256 }
   0x3   :  { %s15_s10 = sshll.u32 %s357_s9, 4  ;;  %p286_p0 = scmp.ne.s32.totalorder %s426_s0, %s285_s13  ;;  %s16_s10 = int_to_ptr.vmem [resolvable:$true] %s15_s10 }
   0x4   :  { %p289_p1 = scmp.lt.u32.totalorder %s285_s13, %s426_s0 }
   0x6   :  { %p291_p2 = pnand %p289_p1, %p286_p0 }
   0x8   :  { %294 = shalt.err (!%p291_p2)
}
   0x9   :  { %s295_s18 = scalar_lea.vmem %s16_s10, 256  ;;  %p300_p4 = scmp.lt.s32.totalorder %s16_s10, %s16_s10 }
   0xa   :  { %p296_p3 = scmp.ne.s32.totalorder %s16_s10, %s295_s18  ;;  %p301_p5 = scmp.lt.s32.totalorder %s295_s18, %s295_s18 }
   0xc   :  { %p302_p6 = por %p301_p5, %p300_p4 }
   0xe   :  { %p303_p7 = pnand %p302_p6, %p296_p3 }
  0x10   :  { %306 = shalt.err (!%p303_p7)
}
  0x11   :  { %s358_s19 = smov 128   ;;  %s359_s20 = smov 8  }
  0x12   :  { %21 = dma.hbm_to_vmem [thread:$0]  %s426_s0, 256, %s16_s10, [#allocation4], %s358_s19, %s358_s19, %s359_s20  }
  0x13   :  { %s360_s23 = smov [#allocation6]   ;;  %s307_s27 = scalar_lea.hbm %s427_s1, 1024 }
  0x14   :  { %s27_s24 = sshll.u32 %s360_s23, 4  ;;  %p308_p8 = scmp.ne.s32.totalorder %s427_s1, %s307_s27  ;;  %s28_s24 = int_to_ptr.vmem [resolvable:$true] %s27_s24 }
  0x15   :  { %p311_p9 = scmp.lt.u32.totalorder %s307_s27, %s427_s1 }
  0x17   :  { %p313_p10 = pnand %p311_p9, %p308_p8 }
  0x19   :  { %316 = shalt.err (!%p313_p10)
}
  0x1a   :  { %s317_s4 = scalar_lea.vmem %s28_s24, 1024  ;;  %p322_p12 = scmp.lt.s32.totalorder %s28_s24, %s28_s24 }
  0x1b   :  { %p318_p11 = scmp.ne.s32.totalorder %s28_s24, %s317_s4  ;;  %p323_p13 = scmp.lt.s32.totalorder %s317_s4, %s317_s4 }
  0x1d   :  { %p324_p0 = por %p323_p13, %p322_p12 }
  0x1f   :  { %p325_p1 = pnand %p324_p0, %p318_p11 }
  0x21   :  { %328 = shalt.err (!%p325_p1)
}
  0x22   :  { %33 = dma.hbm_to_vmem [thread:$0]  %s427_s1, 1024, %s28_s24, [#allocation7], %s358_s19, %s358_s19, %s359_s20  }
  0x23   :  { %351 = dma.done.wait [#allocation4], 256  }
  0x24   :  { %352 = vsyncadd [#allocation4], 4294967040 }
  0x25   :  { %353 = dma.done.wait [#allocation7], 1024  }
  0x26   :  { %354 = vsyncadd [#allocation7], 4294966272  ;;  %v361_v0 = vmov 0   ;;  %v47_v1 = vld [vmem:[#allocation3 + $0x8] sm:$0xff]  ;;  %v46_v2 = vld [vmem:[#allocation3] sm:$0xff]  ;;  %v362_v9 = vmov 1   ;;  %v60_v17 = vlaneseq }
  0x27   :  { %281 = vset.pattern.permute.xlu1 %v361_v0  ;;  %279 = vset.pattern.permute.xlu0 %v361_v0  ;;  %v48_v3 = vld [vmem:[#allocation6] sm:$0xff]  ;;  %v49_v4 = vld [vmem:[#allocation6 + $0x8] sm:$0xff]  ;;  %v50_v5 = vld [vmem:[#allocation6 + $0x10] sm:$0xff]  ;;  %v363_v13 = vmov 2   ;;  %v364_v23 = vmov 0.0   ;;  %vm106_vm6 = vcmask 523264  }
  0x28   :  { %66 = vperm.xlu1 %281, %v47_v1   ;;  %63 = vperm.xlu0 %279, %v46_v2   ;;  %v51_v6 = vld [vmem:[#allocation6 + $0x18] sm:$0xff]  ;;  %v254_v7 = vpack.c.bf16 %v49_v4, %v48_v3  ;;  %v52_v10 = vld [vmem:[#allocation6 + $0x20] sm:$0xff]  ;;  %v53_v11 = vld [vmem:[#allocation6 + $0x28] sm:$0xff]  ;;  %v61_v20 = vand.u32 127, %v60_v17  ;;  %s365_s1 = smov [#allocation8]  }
  0x29   :  { %v258_v8 = vpack.c.bf16 %v51_v6, %v50_v5  ;;  %v262_v12 = vpack.c.bf16 %v53_v11, %v52_v10  ;;  %v54_v14 = vld [vmem:[#allocation6 + $0x30] sm:$0xff]  ;;  %v55_v15 = vld [vmem:[#allocation6 + $0x38] sm:$0xff]  ;;  %s204_s6 = sshll.u32 %s365_s1, 4  ;;  %s205_s6 = int_to_ptr.vmem [resolvable:$true] %s204_s6 }
  0x2a   :  { %255 = vmatprep.subr.bf16.mxu0 %v254_v7  ;;  %v266_v16 = vpack.c.bf16 %v55_v15, %v54_v14  ;;  %s329_s7 = scalar_lea.vmem %s205_s6, 256  ;;  %p334_p3 = scmp.lt.s32.totalorder %s205_s6, %s205_s6 }
  0x2b   :  { %257 = vmatpush3.bf16.msra.mxu0 %v254_v7  ;;  %p330_p2 = scmp.ne.s32.totalorder %s205_s6, %s329_s7  ;;  %p335_p4 = scmp.lt.s32.totalorder %s329_s7, %s329_s7 }
  0x2c   :  { %282 = vset.pattern.permute.xlu1 %v362_v9  ;;  %280 = vset.pattern.permute.xlu0 %v362_v9 }
  0x2d   :  { %80 = vperm.xlu1 %282, %v47_v1   ;;  %77 = vperm.xlu0 %280, %v46_v2   ;;  %p336_p5 = por %p335_p4, %p334_p3 }
  0x2e   :  { %259 = vmatprep.subr.bf16.mxu0 %v258_v8 }
  0x2f   :  { %261 = vmatpush3.bf16.msra.mxu0 %v258_v8  ;;  %p337_p6 = pnand %p336_p5, %p330_p2 }
  0x30   :  { %263 = vmatprep.subr.bf16.mxu0 %v262_v12 }
  0x31   :  { %283 = vset.pattern.permute.xlu1 %v363_v13  ;;  %284 = vset.pattern.permute.xlu0 %v363_v13 }
  0x32   :  { %91 = vperm.xlu1 %283, %v46_v2   ;;  %94 = vperm.xlu0 %284, %v47_v1  }
  0x33   :  { %265 = vmatpush3.bf16.msra.mxu0 %v262_v12 }
  0x34   :  { %267 = vmatprep.subr.bf16.mxu0 %v266_v16 }
  0x37   :  { %269 = vmatpush3.bf16.msra.mxu0 %v266_v16 }
  0xa7   :  { %v67_v18 = vpop.permute.xlu1 %66  ;;  %v64_v19 = vpop.permute.xlu0 %63 }
  0xa8   :  { %vm69_vm2 = vcmp.eq.s32.totalorder %v67_v18, %v61_v20  ;;  %vm68_vm3 = vcmp.eq.s32.totalorder %v64_v19, %v61_v20 }
  0xa9   :  { %v218_v26 = vsel %vm69_vm2, 1.0, %v364_v23  ;;  %v217_v27 = vsel %vm68_vm3, 1.0, %v364_v23 }
  0xac   :  { %v81_v21 = vpop.permute.xlu1 %80  ;;  %v78_v22 = vpop.permute.xlu0 %77 }
  0xad   :  { %vm83_vm0 = vcmp.eq.s32.totalorder %v81_v21, %v61_v20  ;;  %vm82_vm1 = vcmp.eq.s32.totalorder %v78_v22, %v61_v20 }
  0xae   :  { %v220_v24 = vsel %vm83_vm0, 1.0, %v364_v23  ;;  %v219_v25 = vsel %vm82_vm1, 1.0, %v364_v23 }
  0xaf   :  { %v89_v30 = vadd.f32 %v220_v24, %v218_v26  ;;  %v88_v31 = vadd.f32 %v219_v25, %v217_v27 }
  0xb1   :  { %v92_v28 = vpop.permute.xlu1 %91  ;;  %v95_v29 = vpop.permute.xlu0 %94 }
  0xb2   :  { %vm96_vm4 = vcmp.eq.s32.totalorder %v92_v28, %v61_v20  ;;  %vm97_vm5 = vcmp.eq.s32.totalorder %v95_v29, %v61_v20 }
  0xb3   :  { %v221_v32 = vsel %vm96_vm4, 1.0, %v364_v23  ;;  %v222_v33 = vsel %vm97_vm5, 1.0, %v364_v23 }
  0xb4   :  { %v103_v34 = vadd.f32 %v222_v33, %v89_v30  ;;  %v102_v35 = vadd.f32 %v221_v32, %v88_v31 }
  0xb6   :  { %251 = vmatprep.mubr.msk.f32.mxu0 %vm106_vm6, %v102_v35 }
  0xb7   :  { %252 = vmatmul.mubr.msk.f32.vlgmr.msra.gmra.mrb[0].mxu0 %vm106_vm6, %v103_v34 }
 0x18a   :  { %v253_v36 = vpop.f32.mrb[0].mxu0 }
 0x18b   :  { %198 = vst [vmem:[#allocation8 + $0x8] sm:$0xff] %v253_v36  ;;  %v179_v37 = vpop.f32.mrb[1].mxu0 }
 0x18c   :  { %197 = vst [vmem:[#allocation8] sm:$0xff] %v179_v37 }
 0x18d   :  { %340 = shalt.err (!%p337_p6)
}
 0x18e   :  { %s341_s10 = scalar_lea.hbm %s428_s2, 256 }
 0x18f   :  { %p342_p7 = scmp.ne.s32.totalorder %s428_s2, %s341_s10  ;;  %p345_p8 = scmp.lt.u32.totalorder %s341_s10, %s428_s2 }
 0x191   :  { %p347_p9 = pnand %p345_p8, %p342_p7 }
 0x193   :  { %350 = shalt.err (!%p347_p9)
}
 0x194   :  { %210 = dma.vmem_to_hbm [thread:$0]  %s205_s6, 256, %s428_s2, [#allocation5], %s358_s19, %s358_s19, %s359_s20  }
 0x195   :  { %355 = dma.done.wait [#allocation5], 256  }
 0x196   :  { %356 = vsyncadd [#allocation5], 4294967040 }
 0x197   :  { %214 = vsyncpa [#allocation4], 1 }
 0x198   :  { %215 = vsyncpa [#allocation7], 1 }
 0x199   :  { %216 = vsyncpa [#allocation5], 1 }

</bundles_post_ra>
